<compile_context>
chip_gen: v5e
topology: v5e:2x2
jax: 0.10.0
libtpu: 0.0.40
codegen_flags: <defaults>
</compile_context>

<pallas_src>
import functools

import jax
import jax.numpy as jnp
from jax import lax
from jax.experimental import pallas as pl
from jax.experimental.pallas import tpu as pltpu


def _round_up(n, m):
    return ((n + m - 1) // m) * m


def highway_kernel(x_ref, w_ref, b_ref, o_ref):
    """One grid step = one batch tile; all layers run in an in-kernel loop.

    x_ref : [tb, S_pad]        input tile (native dtype)
    w_ref : [L, S_pad, 3*S_pad] fused [Wg|Wn|Wl], [in, out] layout (VMEM-resident)
    b_ref : [L, 1, 3*S_pad]    fused biases, f32
    o_ref : [tb, S_pad]        output tile in the caller's dtype
    """
    num_layers, s_pad, _ = w_ref.shape

    h0 = x_ref[...].astype(jnp.float32)

    def layer_step(l, h):
        # Single fused matmul: [tb, S] @ [S, 3S] -> [tb, 3S], f32 accumulation.
        z = jnp.dot(h.astype(w_ref.dtype), w_ref[l],
                    preferred_element_type=jnp.float32) + b_ref[l]
        gate = jax.nn.sigmoid(z[:, 0 * s_pad:1 * s_pad])      # EUP
        nonlinear = jnp.tanh(z[:, 1 * s_pad:2 * s_pad])       # EUP
        linear = z[:, 2 * s_pad:3 * s_pad]
        # linear + gate * (nonlinear - linear) == gate*nl + (1-gate)*lin
        return linear + gate * (nonlinear - linear)

    h = lax.fori_loop(0, num_layers, layer_step, h0, unroll=True)
    o_ref[...] = h.astype(o_ref.dtype)


def prepare_highway_params(gate_w, gate_b, nonlinear_w, nonlinear_b,
                           linear_w, linear_b, *, weights_dtype=None):
    """One-time parameter fusion (call at load time, NOT per forward pass).

    Inputs use the PyTorch nn.Linear layout stacked over layers:
      *_w : [L, S, S]  ([out, in], y = x @ W^T + b)
      *_b : [L, S]

    Returns (w_cat, b_cat):
      w_cat : [L, S_pad, 3*S_pad]  [in, out] layout, order [gate|nonlinear|linear],
              zero-padded so S_pad % 128 == 0, optionally cast to weights_dtype
              (bf16 recommended on v5e).
      b_cat : [L, 1, 3*S_pad] float32 (added post-matmul in f32).
    """
    L, S, _ = gate_w.shape
    S_pad = _round_up(S, 128)

    def prep_w(w):
        wt = jnp.transpose(w, (0, 2, 1))                       # -> [L, in, out]
        return jnp.pad(wt, ((0, 0), (0, S_pad - S), (0, S_pad - S)))

    def prep_b(b):
        return jnp.pad(b.reshape(L, 1, S), ((0, 0), (0, 0), (0, S_pad - S)))

    w_cat = jnp.concatenate(
        [prep_w(gate_w), prep_w(nonlinear_w), prep_w(linear_w)], axis=-1)
    b_cat = jnp.concatenate(
        [prep_b(gate_b), prep_b(nonlinear_b), prep_b(linear_b)], axis=-1)

    if weights_dtype is not None:
        w_cat = w_cat.astype(weights_dtype)
    return w_cat, b_cat.astype(jnp.float32)


def _default_batch_tile(B):
    """Multiple of 8; split into >=2 tiles only when B is large enough to keep
    both v7x TensorCores busy (weights are VMEM-resident, so extra tiles do
    not re-fetch them)."""
    b8 = _round_up(max(B, 8), 8)
    if b8 <= 512:
        return b8
    return 256


def _vmem_limit_bytes(tb, S_pad, L, w_dtype, x_dtype, out_dtype):
    """Generation-aware scoped-VMEM limit with headroom."""
    w_bytes = jnp.dtype(w_dtype).itemsize
    weights = 2 * (L * S_pad * 3 * S_pad * w_bytes + L * 3 * S_pad * 4)
    acts = 2 * tb * S_pad * (jnp.dtype(x_dtype).itemsize +
                             jnp.dtype(out_dtype).itemsize)
    temps = 3 * tb * 3 * S_pad * 4 + 2 * tb * S_pad * 4
    est = weights + acts + temps + (4 << 20)
    try:
        cap = int(pltpu.get_tpu_info().vmem_capacity_bytes) * 3 // 4
    except Exception:  # pragma: no cover - conservative fallback
        cap = 48 << 20
    return int(min(max(est, 16 << 20), cap))


@functools.partial(jax.jit, static_argnames=("batch_tile",))
def highway_forward(x, w_cat, b_cat, *, batch_tile=None):
    """x: [B, S] (native dtype); w_cat/b_cat from prepare_highway_params."""
    B, S = x.shape
    L, S_pad, three_S_pad = w_cat.shape
    assert three_S_pad == 3 * S_pad and S <= S_pad and S_pad % 128 == 0

    tb = _default_batch_tile(B) if batch_tile is None else batch_tile
    assert tb % 8 == 0, "batch_tile must be a multiple of 8"
    B_pad = _round_up(B, tb)
    nb = B_pad // tb

    if (B_pad, S_pad) != (B, S):
        x = jnp.pad(x, ((0, B_pad - B), (0, S_pad - S)))

    x_spec = pl.BlockSpec((tb, S_pad), lambda b: (b, 0))
    w_spec = pl.BlockSpec((L, S_pad, 3 * S_pad), lambda b: (0, 0, 0))  # resident
    b_spec = pl.BlockSpec((L, 1, 3 * S_pad), lambda b: (0, 0, 0))      # resident
    o_spec = pl.BlockSpec((tb, S_pad), lambda b: (b, 0))

    out = pl.pallas_call(
        highway_kernel,
        out_shape=jax.ShapeDtypeStruct((B_pad, S_pad), x.dtype),
        grid_spec=pltpu.PrefetchScalarGridSpec(
            num_scalar_prefetch=0,
            grid=(nb,),
            in_specs=[x_spec, w_spec, b_spec],
            out_specs=o_spec,
        ),
        compiler_params=pltpu.CompilerParams(
            dimension_semantics=("parallel",),
            vmem_limit_bytes=_vmem_limit_bytes(
                tb, S_pad, L, w_cat.dtype, x.dtype, x.dtype),
        ),
    )(x, w_cat, b_cat)

    if (B_pad, S_pad) != (B, S):
        out = out[:B, :S]
    return out


def highway_reference(x, gate_w, gate_b, nonlinear_w, nonlinear_b,
                      linear_w, linear_b):
    """Pure-JAX reference with the PyTorch parameter layout (f32 math)."""
    h = x.astype(jnp.float32)
    for l in range(gate_w.shape[0]):
        gate = jax.nn.sigmoid(h @ gate_w[l].T + gate_b[l])
        nonlinear = jnp.tanh(h @ nonlinear_w[l].T + nonlinear_b[l])
        linear = h @ linear_w[l].T + linear_b[l]
        h = gate * nonlinear + (1.0 - gate) * linear
    return h.astype(x.dtype)


if __name__ == "__main__":
    batch = 8
    size = 32
    num_layers = 2

    key = jax.random.PRNGKey(0)
    keys = jax.random.split(key, 7)

    x = jax.random.normal(keys[0], (batch, size), dtype=jnp.float32)

    # PyTorch nn.Linear layout: weight [out, in], bias [out]; stacked over layers.
    scale = 1.0 / (size ** 0.5)
    gate_w = jax.random.uniform(keys[1], (num_layers, size, size), jnp.float32, -scale, scale)
    nonlinear_w = jax.random.uniform(keys[2], (num_layers, size, size), jnp.float32, -scale, scale)
    linear_w = jax.random.uniform(keys[3], (num_layers, size, size), jnp.float32, -scale, scale)
    gate_b = jax.random.uniform(keys[4], (num_layers, size), jnp.float32, -scale, scale)
    nonlinear_b = jax.random.uniform(keys[5], (num_layers, size), jnp.float32, -scale, scale)
    linear_b = jax.random.uniform(keys[6], (num_layers, size), jnp.float32, -scale, scale)

    ref = highway_reference(x, gate_w, gate_b, nonlinear_w, nonlinear_b,
                            linear_w, linear_b)

    # One-time parameter fusion (f32 path).
    w_cat, b_cat = prepare_highway_params(
        gate_w, gate_b, nonlinear_w, nonlinear_b, linear_w, linear_b)
    out_f32 = jax.block_until_ready(highway_forward(x, w_cat, b_cat))
    assert out_f32.shape == (batch, size)
    assert jnp.allclose(out_f32, ref, atol=1e-4, rtol=1e-4), "f32 mismatch vs reference"

    # bf16-weight path (perf option, recommended on v5e): matmul operands in
    # bf16 (activations are rounded to bf16 for the MXU op), f32 combine.
    w_bf, b_bf = prepare_highway_params(
        gate_w, gate_b, nonlinear_w, nonlinear_b, linear_w, linear_b,
        weights_dtype=jnp.bfloat16)
    out_bf16 = jax.block_until_ready(highway_forward(x, w_bf, b_bf))
    assert jnp.allclose(out_bf16, ref, atol=1e-1, rtol=1e-1), "bf16 mismatch vs reference"

    print("KERNEL_OK")
</pallas_src>

<mosaic_0001>
module attributes {stable_mosaic.version = 11 : i64} {
  func.func @highway_kernel(%arg0: i32, %arg1: memref<8x128xf32, #tpu.memory_space<vmem>>, %arg2: memref<2x128x384xf32, #tpu.memory_space<vmem>>, %arg3: memref<2x1x384xf32, #tpu.memory_space<vmem>>, %arg4: memref<8x128xf32, #tpu.memory_space<vmem>>) attributes {dimension_semantics = [#tpu.dimension_semantics<parallel>], iteration_bounds = array<i64: 1>, scalar_prefetch = 0 : i64, scratch_operands = 0 : i64, tpu.core_type = #tpu.core_type<tc>, window_params = [{transform_indices = @transform_0, window_bounds = array<i64: 8, 128>}, {pipeline_mode = #tpu.pipeline_mode<synchronous>, transform_indices = @transform_1, window_bounds = array<i64: 2, 128, 384>}, {pipeline_mode = #tpu.pipeline_mode<synchronous>, transform_indices = @transform_2, window_bounds = array<i64: 2, 1, 384>}, {transform_indices = @transform_3, window_bounds = array<i64: 8, 128>}]} {
    %c0 = arith.constant 0 : index
    %c0_0 = arith.constant 0 : index
    %0 = vector.load %arg1[%c0, %c0_0] : memref<8x128xf32, #tpu.memory_space<vmem>>, vector<8x128xf32>
    %c0_i32 = arith.constant 0 : i32
    %1 = arith.index_cast %c0_i32 : i32 to index
    %c0_1 = arith.constant 0 : index
    %c0_2 = arith.constant 0 : index
    %2 = vector.load %arg2[%1, %c0_1, %c0_2] : memref<2x128x384xf32, #tpu.memory_space<vmem>>, vector<1x128x384xf32>
    %3 = vector.shape_cast %2 : vector<1x128x384xf32> to vector<128x384xf32>
    %cst = arith.constant dense<0.000000e+00> : vector<8x384xf32>
    %4 = tpu.matmul %0, %3, %cst {dimension_numbers = #tpu.dot_dimension_numbers<[1], [0], [0], [1], [0, 0, 1, 1], [], []>} : vector<8x128xf32>, vector<128x384xf32>, vector<8x384xf32> -> vector<8x384xf32>
    %5 = arith.index_cast %c0_i32 : i32 to index
    %c0_3 = arith.constant 0 : index
    %c0_4 = arith.constant 0 : index
    %6 = vector.load %arg3[%5, %c0_3, %c0_4] : memref<2x1x384xf32, #tpu.memory_space<vmem>>, vector<1x1x384xf32>
    %7 = vector.shape_cast %6 : vector<1x1x384xf32> to vector<1x384xf32>
    %8 = vector.broadcast %7 : vector<1x384xf32> to vector<8x384xf32>
    %9 = arith.addf %4, %8 : vector<8x384xf32>
    %10 = vector.extract_strided_slice %9 {offsets = [0, 0], sizes = [8, 128], strides = [1, 1]} : vector<8x384xf32> to vector<8x128xf32>
    %11 = arith.negf %10 : vector<8x128xf32>
    %12 = math.exp %11 : vector<8x128xf32>
    %cst_5 = arith.constant 1.000000e+00 : f32
    %13 = vector.broadcast %cst_5 : f32 to vector<8x128xf32>
    %14 = arith.addf %13, %12 : vector<8x128xf32>
    %15 = arith.divf %13, %14 : vector<8x128xf32>
    %16 = vector.extract_strided_slice %9 {offsets = [0, 128], sizes = [8, 128], strides = [1, 1]} : vector<8x384xf32> to vector<8x128xf32>
    %17 = math.tanh %16 : vector<8x128xf32>
    %18 = vector.extract_strided_slice %9 {offsets = [0, 256], sizes = [8, 128], strides = [1, 1]} : vector<8x384xf32> to vector<8x128xf32>
    %19 = arith.subf %17, %18 : vector<8x128xf32>
    %20 = arith.mulf %15, %19 : vector<8x128xf32>
    %21 = arith.addf %18, %20 : vector<8x128xf32>
    %c1_i32 = arith.constant 1 : i32
    %22 = arith.index_cast %c1_i32 : i32 to index
    %c0_6 = arith.constant 0 : index
    %c0_7 = arith.constant 0 : index
    %23 = vector.load %arg2[%22, %c0_6, %c0_7] : memref<2x128x384xf32, #tpu.memory_space<vmem>>, vector<1x128x384xf32>
    %24 = vector.shape_cast %23 : vector<1x128x384xf32> to vector<128x384xf32>
    %cst_8 = arith.constant dense<0.000000e+00> : vector<8x384xf32>
    %25 = tpu.matmul %21, %24, %cst_8 {dimension_numbers = #tpu.dot_dimension_numbers<[1], [0], [0], [1], [0, 0, 1, 1], [], []>} : vector<8x128xf32>, vector<128x384xf32>, vector<8x384xf32> -> vector<8x384xf32>
    %26 = arith.index_cast %c1_i32 : i32 to index
    %c0_9 = arith.constant 0 : index
    %c0_10 = arith.constant 0 : index
    %27 = vector.load %arg3[%26, %c0_9, %c0_10] : memref<2x1x384xf32, #tpu.memory_space<vmem>>, vector<1x1x384xf32>
    %28 = vector.shape_cast %27 : vector<1x1x384xf32> to vector<1x384xf32>
    %29 = vector.broadcast %28 : vector<1x384xf32> to vector<8x384xf32>
    %30 = arith.addf %25, %29 : vector<8x384xf32>
    %31 = vector.extract_strided_slice %30 {offsets = [0, 0], sizes = [8, 128], strides = [1, 1]} : vector<8x384xf32> to vector<8x128xf32>
    %32 = arith.negf %31 : vector<8x128xf32>
    %33 = math.exp %32 : vector<8x128xf32>
    %cst_11 = arith.constant 1.000000e+00 : f32
    %34 = vector.broadcast %cst_11 : f32 to vector<8x128xf32>
    %35 = arith.addf %34, %33 : vector<8x128xf32>
    %36 = arith.divf %34, %35 : vector<8x128xf32>
    %37 = vector.extract_strided_slice %30 {offsets = [0, 128], sizes = [8, 128], strides = [1, 1]} : vector<8x384xf32> to vector<8x128xf32>
    %38 = math.tanh %37 : vector<8x128xf32>
    %39 = vector.extract_strided_slice %30 {offsets = [0, 256], sizes = [8, 128], strides = [1, 1]} : vector<8x384xf32> to vector<8x128xf32>
    %40 = arith.subf %38, %39 : vector<8x128xf32>
    %41 = arith.mulf %36, %40 : vector<8x128xf32>
    %42 = arith.addf %39, %41 : vector<8x128xf32>
    %c2_i32 = arith.constant 2 : i32
    %c0_12 = arith.constant 0 : index
    %c0_13 = arith.constant 0 : index
    %43 = vector.load %arg4[%c0_12, %c0_13] : memref<8x128xf32, #tpu.memory_space<vmem>>, vector<8x128xf32>
    tpu.vector_store %arg4[%c0_12, %c0_13], %42 {strides = array<i32>} : memref<8x128xf32, #tpu.memory_space<vmem>>, vector<8x128xf32>,
    return
  }
  func.func @transform_0(%arg0: i32) -> (i32, i32) {
    %c0_i32 = arith.constant 0 : i32
    %c0_i32_0 = arith.constant 0 : i32
    return %arg0, %c0_i32 : i32, i32
  }
  func.func @transform_1(%arg0: i32) -> (i32, i32, i32) {
    %c0_i32 = arith.constant 0 : i32
    %c0_i32_0 = arith.constant 0 : i32
    %c0_i32_1 = arith.constant 0 : i32
    %c0_i32_2 = arith.constant 0 : i32
    return %c0_i32, %c0_i32_0, %c0_i32_1 : i32, i32, i32
  }
  func.func @transform_2(%arg0: i32) -> (i32, i32, i32) {
    %c0_i32 = arith.constant 0 : i32
    %c0_i32_0 = arith.constant 0 : i32
    %c0_i32_1 = arith.constant 0 : i32
    %c0_i32_2 = arith.constant 0 : i32
    return %c0_i32, %c0_i32_0, %c0_i32_1 : i32, i32, i32
  }
  func.func @transform_3(%arg0: i32) -> (i32, i32) {
    %c0_i32 = arith.constant 0 : i32
    %c0_i32_0 = arith.constant 0 : i32
    return %arg0, %c0_i32 : i32, i32
  }
}

</mosaic_0001>

<bundles_post_ra>
// kernel: highway_forward.1
= control target key start
LH: loop header
LB: loop body
LE: loop exit
PB: predicated region body
PF: predicated region fallthrough
CT: control target
= control target key end

     0   :  { %8 = vsyncpa [#allocation3], 0  ;;  %s440_s0 = inlined_call_operand.vmem [shape: f32[8,128], index: 0, kind: input, shape index: {}]   ;;  %s441_s1 = inlined_call_operand.hbm [shape: f32[2,128,384], index: 1, kind: input, shape index: {}]   ;;  %s442_s2 = inlined_call_operand.vmem [shape: f32[2,1,384], index: 2, kind: input, shape index: {}]   ;;  %s443_s3 = inlined_call_operand.hbm [shape: f32[8,128], index: 3, kind: output, shape index: {}]  }
   0x1   :  { %9 = vsyncpa [#allocation4], 0  ;;  %s16_s14 = sshll.u32 %s441_s1, 4  ;;  %s401_s15 = smov [#allocation2]   ;;  %s17_s14 = int_to_ptr.hbm [resolvable:$true] %s16_s14 }
   0x2   :  { %s18_s16 = sshll.u32 %s401_s15, 4  ;;  %s402_s17 = smov 384   ;;  %s19_s16 = int_to_ptr.vmem [resolvable:$true] %s18_s16 }
   0x3   :  { %s403_s18 = smov 24  }
   0x4   :  { %24 = dma.hbm_to_vmem [thread:$0]  %s17_s14, 12288, %s19_s16, [#allocation3], %s402_s17, %s402_s17, %s403_s18  }
   0x5   :  { %397 = dma.done.wait [#allocation3], 12288  }
   0x6   :  { %398 = vsyncadd [#allocation3], 4294955008  ;;  %v77_v0 = vld [vmem:[#allocation2 + $0x168] sm:$0xff]  ;;  %v74_v1 = vld [vmem:[#allocation2 + $0x150] sm:$0xff]  ;;  %s320_s26 = sshll.u32 %s443_s3, 4  ;;  %s321_s26 = int_to_ptr.hbm [resolvable:$true] %s320_s26 }
   0x7   :  { %88 = vmatpush.msra.mxu0 %v77_v0  ;;  %v71_v2 = vld [vmem:[#allocation2 + $0x138] sm:$0xff]  ;;  %v78_v3 = vld [vmem:[#allocation2 + $0x170] sm:$0xff]  ;;  %v68_v4 = vld [vmem:[#allocation2 + $0x120] sm:$0xff] }
   0x8   :  { %108 = vmatpush.msra.mxu1 %v78_v3  ;;  %v79_v5 = vld [vmem:[#allocation2 + $0x178] sm:$0xff]  ;;  %v76_v7 = vld [vmem:[#allocation2 + $0x160] sm:$0xff]  ;;  %v65_v9 = vld [vmem:[#allocation2 + $0x108] sm:$0xff] }
   0x9   :  { %89 = vmatpush.msra.mxu0 %v74_v1  ;;  %v75_v6 = vld [vmem:[#allocation2 + $0x158] sm:$0xff]  ;;  %128 = vmatpush.msra.mxu2 %v79_v5  ;;  %v72_v8 = vld [vmem:[#allocation2 + $0x140] sm:$0xff]  ;;  %v73_v10 = vld [vmem:[#allocation2 + $0x148] sm:$0xff] }
   0xa   :  { %109 = vmatpush.msra.mxu1 %v75_v6  ;;  %v69_v11 = vld [vmem:[#allocation2 + $0x128] sm:$0xff]  ;;  %v62_v12 = vld [vmem:[#allocation2 + $0xf0] sm:$0xff]  ;;  %v59_v15 = vld [vmem:[#allocation2 + $0xd8] sm:$0xff] }
   0xb   :  { %90 = vmatpush.msra.mxu0 %v71_v2  ;;  %129 = vmatpush.msra.mxu2 %v76_v7  ;;  %v70_v13 = vld [vmem:[#allocation2 + $0x130] sm:$0xff]  ;;  %v67_v16 = vld [vmem:[#allocation2 + $0x118] sm:$0xff]  ;;  %v56_v18 = vld [vmem:[#allocation2 + $0xc0] sm:$0xff] }
   0xc   :  { %110 = vmatpush.msra.mxu1 %v72_v8  ;;  %v66_v14 = vld [vmem:[#allocation2 + $0x110] sm:$0xff]  ;;  %v63_v17 = vld [vmem:[#allocation2 + $0xf8] sm:$0xff]  ;;  %v64_v19 = vld [vmem:[#allocation2 + $0x100] sm:$0xff] }
   0xd   :  { %91 = vmatpush.msra.mxu0 %v68_v4  ;;  %130 = vmatpush.msra.mxu2 %v73_v10  ;;  %v60_v20 = vld [vmem:[#allocation2 + $0xe0] sm:$0xff]  ;;  %v53_v21 = vld [vmem:[#allocation2 + $0xa8] sm:$0xff]  ;;  %v50_v24 = vld [vmem:[#allocation2 + $0x90] sm:$0xff] }
   0xe   :  { %111 = vmatpush.msra.mxu1 %v69_v11  ;;  %v61_v22 = vld [vmem:[#allocation2 + $0xe8] sm:$0xff]  ;;  %v58_v25 = vld [vmem:[#allocation2 + $0xd0] sm:$0xff]  ;;  %v47_v27 = vld [vmem:[#allocation2 + $0x78] sm:$0xff] }
   0xf   :  { %92 = vmatpush.msra.mxu0 %v65_v9  ;;  %131 = vmatpush.msra.mxu2 %v70_v13  ;;  %v57_v23 = vld [vmem:[#allocation2 + $0xc8] sm:$0xff]  ;;  %v54_v26 = vld [vmem:[#allocation2 + $0xb0] sm:$0xff]  ;;  %v55_v28 = vld [vmem:[#allocation2 + $0xb8] sm:$0xff] }
  0x10   :  { %112 = vmatpush.msra.mxu1 %v66_v14  ;;  %v51_v29 = vld [vmem:[#allocation2 + $0x98] sm:$0xff]  ;;  %v44_v30 = vld [vmem:[#allocation2 + $0x60] sm:$0xff]  ;;  %v41_v33 = vld [vmem:[#allocation2 + $0x48] sm:$0xff] }
  0x11   :  { %93 = vmatpush.msra.mxu0 %v62_v12  ;;  %132 = vmatpush.msra.mxu2 %v67_v16  ;;  %v52_v31 = vld [vmem:[#allocation2 + $0xa0] sm:$0xff]  ;;  %v49_v34 = vld [vmem:[#allocation2 + $0x88] sm:$0xff]  ;;  %v38_v36 = vld [vmem:[#allocation2 + $0x30] sm:$0xff] }
  0x12   :  { %113 = vmatpush.msra.mxu1 %v63_v17  ;;  %v48_v32 = vld [vmem:[#allocation2 + $0x80] sm:$0xff]  ;;  %v45_v35 = vld [vmem:[#allocation2 + $0x68] sm:$0xff]  ;;  %v46_v37 = vld [vmem:[#allocation2 + $0x70] sm:$0xff] }
  0x13   :  { %94 = vmatpush.msra.mxu0 %v59_v15  ;;  %133 = vmatpush.msra.mxu2 %v64_v19  ;;  %v42_v38 = vld [vmem:[#allocation2 + $0x50] sm:$0xff]  ;;  %v35_v39 = vld [vmem:[#allocation2 + $0x18] sm:$0xff]  ;;  %v32_v42 = vld [vmem:[#allocation2] sm:$0xff] }
  0x14   :  { %114 = vmatpush.msra.mxu1 %v60_v20  ;;  %v43_v40 = vld [vmem:[#allocation2 + $0x58] sm:$0xff]  ;;  %v40_v43 = vld [vmem:[#allocation2 + $0x40] sm:$0xff]  ;;  %v37_v46 = vld [vmem:[#allocation2 + $0x28] sm:$0xff] }
  0x15   :  { %95 = vmatpush.msra.mxu0 %v56_v18  ;;  %134 = vmatpush.msra.mxu2 %v61_v22  ;;  %v39_v41 = vld [vmem:[#allocation2 + $0x38] sm:$0xff]  ;;  %v31_v44 = vld [vmem:[%s440_s0] sm:$0xff]  ;;  %v33_v47 = vld [vmem:[#allocation2 + $0x8] sm:$0xff] }
  0x16   :  { %115 = vmatpush.msra.mxu1 %v57_v23  ;;  %v36_v45 = vld [vmem:[#allocation2 + $0x20] sm:$0xff]  ;;  %v34_v48 = vld [vmem:[#allocation2 + $0x10] sm:$0xff]  ;;  %v217_v49 = vld [vmem:[#allocation2 + $0x2e8] sm:$0xff] }
  0x17   :  { %96 = vmatpush.msra.mxu0 %v53_v21  ;;  %135 = vmatpush.msra.mxu2 %v58_v25  ;;  %v218_v50 = vld [vmem:[#allocation2 + $0x2f0] sm:$0xff]  ;;  %v219_v51 = vld [vmem:[#allocation2 + $0x2f8] sm:$0xff]  ;;  %v216_v54 = vld [vmem:[#allocation2 + $0x2e0] sm:$0xff] }
  0x18   :  { %116 = vmatpush.msra.mxu1 %v54_v26  ;;  %229 = vmatpush.msra.mxu3 %v217_v49  ;;  %v214_v52 = vld [vmem:[#allocation2 + $0x2d0] sm:$0xff]  ;;  %v215_v53 = vld [vmem:[#allocation2 + $0x2d8] sm:$0xff]  ;;  %v212_v56 = vld [vmem:[#allocation2 + $0x2c0] sm:$0xff] }
  0x19   :  { %97 = vmatpush.msra.mxu0 %v50_v24  ;;  %136 = vmatpush.msra.mxu2 %v55_v28  ;;  %v211_v55 = vld [vmem:[#allocation2 + $0x2b8] sm:$0xff]  ;;  %v213_v57 = vld [vmem:[#allocation2 + $0x2c8] sm:$0xff]  ;;  %v208_v58 = vld [vmem:[#allocation2 + $0x2a0] sm:$0xff] }
  0x1a   :  { %117 = vmatpush.msra.mxu1 %v51_v29  ;;  %230 = vmatpush.msra.mxu3 %v214_v52  ;;  %v209_v59 = vld [vmem:[#allocation2 + $0x2a8] sm:$0xff]  ;;  %v210_v60 = vld [vmem:[#allocation2 + $0x2b0] sm:$0xff]  ;;  %v207_v63 = vld [vmem:[#allocation2 + $0x298] sm:$0xff] }
  0x1b   :  { %98 = vmatpush.msra.mxu0 %v47_v27  ;;  %137 = vmatpush.msra.mxu2 %v52_v31  ;;  %v205_v61 = vld [vmem:[#allocation2 + $0x288] sm:$0xff]  ;;  %v206_v62 = vld [vmem:[#allocation2 + $0x290] sm:$0xff]  ;;  %v203_v1 = vld [vmem:[#allocation2 + $0x278] sm:$0xff] }
  0x1c   :  { %118 = vmatpush.msra.mxu1 %v48_v32  ;;  %231 = vmatpush.msra.mxu3 %v211_v55  ;;  %v202_v0 = vld [vmem:[#allocation2 + $0x270] sm:$0xff]  ;;  %v204_v2 = vld [vmem:[#allocation2 + $0x280] sm:$0xff]  ;;  %v199_v3 = vld [vmem:[#allocation2 + $0x258] sm:$0xff] }
  0x1d   :  { %99 = vmatpush.msra.mxu0 %v44_v30  ;;  %138 = vmatpush.msra.mxu2 %v49_v34  ;;  %v200_v4 = vld [vmem:[#allocation2 + $0x260] sm:$0xff]  ;;  %v201_v5 = vld [vmem:[#allocation2 + $0x268] sm:$0xff]  ;;  %v198_v8 = vld [vmem:[#allocation2 + $0x250] sm:$0xff] }
  0x1e   :  { %119 = vmatpush.msra.mxu1 %v45_v35  ;;  %232 = vmatpush.msra.mxu3 %v208_v58  ;;  %v196_v6 = vld [vmem:[#allocation2 + $0x240] sm:$0xff]  ;;  %v197_v7 = vld [vmem:[#allocation2 + $0x248] sm:$0xff]  ;;  %v194_v10 = vld [vmem:[#allocation2 + $0x230] sm:$0xff] }
  0x1f   :  { %100 = vmatpush.msra.mxu0 %v41_v33  ;;  %139 = vmatpush.msra.mxu2 %v46_v37  ;;  %v193_v9 = vld [vmem:[#allocation2 + $0x228] sm:$0xff]  ;;  %v195_v11 = vld [vmem:[#allocation2 + $0x238] sm:$0xff]  ;;  %v190_v12 = vld [vmem:[#allocation2 + $0x210] sm:$0xff] }
  0x20   :  { %120 = vmatpush.msra.mxu1 %v42_v38  ;;  %233 = vmatpush.msra.mxu3 %v205_v61  ;;  %v191_v13 = vld [vmem:[#allocation2 + $0x218] sm:$0xff]  ;;  %v192_v14 = vld [vmem:[#allocation2 + $0x220] sm:$0xff]  ;;  %v189_v17 = vld [vmem:[#allocation2 + $0x208] sm:$0xff] }
  0x21   :  { %101 = vmatpush.msra.mxu0 %v38_v36  ;;  %140 = vmatpush.msra.mxu2 %v43_v40  ;;  %v187_v15 = vld [vmem:[#allocation2 + $0x1f8] sm:$0xff]  ;;  %v188_v16 = vld [vmem:[#allocation2 + $0x200] sm:$0xff]  ;;  %v185_v19 = vld [vmem:[#allocation2 + $0x1e8] sm:$0xff] }
  0x22   :  { %121 = vmatpush.msra.mxu1 %v39_v41  ;;  %234 = vmatpush.msra.mxu3 %v202_v0  ;;  %v184_v18 = vld [vmem:[#allocation2 + $0x1e0] sm:$0xff]  ;;  %v186_v20 = vld [vmem:[#allocation2 + $0x1f0] sm:$0xff]  ;;  %v181_v22 = vld [vmem:[#allocation2 + $0x1c8] sm:$0xff] }
  0x23   :  { %102 = vmatpush.msra.mxu0 %v35_v39  ;;  %141 = vmatpush.msra.mxu2 %v40_v43  ;;  %v80_v21 = vld [vmem:[%s442_s2] sm:$0x7]  ;;  %v182_v23 = vld [vmem:[#allocation2 + $0x1d0] sm:$0xff]  ;;  %v183_v24 = vld [vmem:[#allocation2 + $0x1d8] sm:$0xff] }
  0x24   :  { %122 = vmatpush.msra.mxu1 %v36_v45  ;;  %235 = vmatpush.msra.mxu3 %v199_v3  ;;  %v82_v25 = vperm.slane %v80_v21, 0  ;;  %v178_v26 = vld [vmem:[#allocation2 + $0x1b0] sm:$0xff]  ;;  %v179_v27 = vld [vmem:[#allocation2 + $0x1b8] sm:$0xff]  ;;  %v180_v28 = vld [vmem:[#allocation2 + $0x1c0] sm:$0xff]  ;;  %v83_v38 = vperm.slane %v80_v21, 1  ;;  %v84_v43 = vperm.slane %v80_v21, 2 }
  0x25   :  { %103 = vmatpush.msra.mxu0 %v32_v42  ;;  %142 = vmatpush.msra.mxu2 %v37_v46  ;;  %v175_v29 = vld [vmem:[#allocation2 + $0x198] sm:$0xff]  ;;  %v176_v30 = vld [vmem:[#allocation2 + $0x1a0] sm:$0xff]  ;;  %v177_v31 = vld [vmem:[#allocation2 + $0x1a8] sm:$0xff] }
  0x26   :  { %104 = vmatmul.f32.vlgmr.msra.gmra.mxu0 %v31_v44  ;;  %123 = vmatpush.msra.mxu1 %v33_v47  ;;  %v172_v34 = vld [vmem:[#allocation2 + $0x180] sm:$0xff]  ;;  %v173_v35 = vld [vmem:[#allocation2 + $0x188] sm:$0xff]  ;;  %v174_v36 = vld [vmem:[#allocation2 + $0x190] sm:$0xff] }
  0x27   :  { %124 = vmatmul.f32.vlgmr.msra.gmra.mxu1 %v31_v44  ;;  %143 = vmatpush.msra.mxu2 %v34_v48 }
  0x28   :  { %144 = vmatmul.f32.vlgmr.msra.gmra.mxu2 %v31_v44  ;;  %249 = vmatpush.msrb.mxu0 %v218_v50 }
  0x29   :  { %269 = vmatpush.msrb.mxu1 %v219_v51  ;;  %236 = vmatpush.msra.mxu3 %v196_v6 }
  0x2a   :  { %250 = vmatpush.msrb.mxu0 %v215_v53 }
  0x2b   :  { %270 = vmatpush.msrb.mxu1 %v216_v54  ;;  %237 = vmatpush.msra.mxu3 %v193_v9 }
  0x2c   :  { %251 = vmatpush.msrb.mxu0 %v212_v56 }
  0x2d   :  { %271 = vmatpush.msrb.mxu1 %v213_v57  ;;  %238 = vmatpush.msra.mxu3 %v190_v12 }
  0x2e   :  { %252 = vmatpush.msrb.mxu0 %v209_v59 }
  0x2f   :  { %272 = vmatpush.msrb.mxu1 %v210_v60  ;;  %239 = vmatpush.msra.mxu3 %v187_v15  ;;  %v331_v60 = vld [vmem:[%s442_s2 + $0x3] sm:$0x7]  ;;  %s404_s2 = smov [#allocation5]  }
  0x30   :  { %253 = vmatpush.msrb.mxu0 %v206_v62  ;;  %v223_v61 = vperm.slane %v331_v60, 0  ;;  %s318_s23 = sshll.u32 %s404_s2, 4  ;;  %s319_s23 = int_to_ptr.vmem [resolvable:$true] %s318_s23 }
  0x31   :  { %273 = vmatpush.msrb.mxu1 %v207_v63  ;;  %240 = vmatpush.msra.mxu3 %v184_v18 }
  0x32   :  { %254 = vmatpush.msrb.mxu0 %v203_v1 }
  0x33   :  { %274 = vmatpush.msrb.mxu1 %v204_v2  ;;  %241 = vmatpush.msra.mxu3 %v181_v22  ;;  %v224_v2 = vperm.slane %v331_v60, 1 }
  0x34   :  { %255 = vmatpush.msrb.mxu0 %v200_v4 }
  0x35   :  { %275 = vmatpush.msrb.mxu1 %v201_v5  ;;  %242 = vmatpush.msra.mxu3 %v178_v26 }
  0x36   :  { %256 = vmatpush.msrb.mxu0 %v197_v7 }
  0x37   :  { %276 = vmatpush.msrb.mxu1 %v198_v8  ;;  %243 = vmatpush.msra.mxu3 %v175_v29  ;;  %v225_v8 = vperm.slane %v331_v60, 2 }
  0x38   :  { %257 = vmatpush.msrb.mxu0 %v194_v10 }
  0x39   :  { %277 = vmatpush.msrb.mxu1 %v195_v11  ;;  %244 = vmatpush.msra.mxu3 %v172_v34 }
  0x3a   :  { %258 = vmatpush.msrb.mxu0 %v191_v13 }
  0x3b   :  { %278 = vmatpush.msrb.mxu1 %v192_v14 }
  0x3c   :  { %259 = vmatpush.msrb.mxu0 %v188_v16 }
  0x3d   :  { %279 = vmatpush.msrb.mxu1 %v189_v17 }
  0x3e   :  { %260 = vmatpush.msrb.mxu0 %v185_v19 }
  0x3f   :  { %280 = vmatpush.msrb.mxu1 %v186_v20 }
  0x40   :  { %261 = vmatpush.msrb.mxu0 %v182_v23 }
  0x41   :  { %281 = vmatpush.msrb.mxu1 %v183_v24 }
  0x42   :  { %262 = vmatpush.msrb.mxu0 %v179_v27 }
  0x43   :  { %282 = vmatpush.msrb.mxu1 %v180_v28 }
  0x44   :  { %263 = vmatpush.msrb.mxu0 %v176_v30 }
  0x45   :  { %283 = vmatpush.msrb.mxu1 %v177_v31 }
  0x46   :  { %264 = vmatpush.msrb.mxu0 %v173_v35 }
  0x47   :  { %284 = vmatpush.msrb.mxu1 %v174_v36 }
  0xa3   :  { %v105_v32 = vpop.f32.mrf.mxu0 }
  0xa4   :  { %v106_v33 = vadd.f32 %v105_v32, %v82_v25  ;;  %v125_v40 = vpop.f32.mrf.mxu1 }
  0xa5   :  { %v126_v42 = vadd.f32 %v125_v40, %v83_v38 }
  0xa6   :  { %v330_v37 = vmul.f32 -1.442695, %v106_v33 }
  0xa8   :  { %337 = vpow2.f32 %v330_v37 }
  0xab   :  { %v145_v45 = vpop.f32.mrf.mxu2 }
  0xac   :  { %v146_v47 = vadd.f32 %v145_v45, %v84_v43 }
  0xae   :  { %v338_v39 = vpop.eup %337 }
  0xaf   :  { %v151_v41 = vadd.f32 1.0, %v338_v39 }
  0xb1   :  { %339 = vrcp.f32 %v151_v41  ;;  %v163_v50 = vand.u32 2147483648, %v151_v41  ;;  %v161_v52 = vand.u32 2147483647, %v151_v41  ;;  %vm157_vm1 = vweird.f32 %v151_v41 }
  0xb2   :  { %341 = vtanh.f32 %v126_v42 }
  0xb3   :  { %v164_v55 = vor.u32 1.1754944e-38, %v163_v50  ;;  %vm162_vm3 = vcmp.eq.f32.partialorder %v161_v52, 8.507059e+37 }
  0xb7   :  { %v340_v44 = vpop.eup %339 }
  0xb8   :  { %v153_v46 = vmul.f32 %v340_v44, %v151_v41  ;;  %v342_v49 = vpop.eup %341  ;;  %vm158_vm0 = vweird.f32 %v340_v44 }
  0xb9   :  { %v168_v54 = vsub.f32 %v342_v49, %v146_v47  ;;  %vm159_vm2 = vmor %vm157_vm1, %vm158_vm0 }
  0xba   :  { %v154_v48 = vsub.f32 1.0, %v153_v46 }
  0xbc   :  { %v155_v51 = vmul.f32 %v340_v44, %v154_v48 }
  0xbe   :  { %v156_v53 = vadd.f32 %v340_v44, %v155_v51 }
  0xc0   :  { %v160_v56 = vsel %vm159_vm2, %v340_v44, %v156_v53 }
  0xc1   :  { %v165_v57 = vsel %vm162_vm3, %v164_v55, %v160_v56 }
  0xc2   :  { %v169_v58 = vmul.f32 %v168_v54, %v165_v57 }
  0xc4   :  { %v170_v59 = vadd.f32 %v169_v58, %v146_v47 }
  0xc6   :  { %245 = vmatmul.f32.vlgmr.msra.gmra.mxu3 %v170_v59  ;;  %265 = vmatmul.f32.vlgmr.msrb.gmra.mxu0 %v170_v59 }
  0xc7   :  { %285 = vmatmul.f32.vlgmr.msrb.gmra.mxu1 %v170_v59 }
 0x143   :  { %v266_v4 = vpop.f32.mrf.mxu0 }
 0x144   :  { %v267_v5 = vadd.f32 %v266_v4, %v224_v2  ;;  %v286_v10 = vpop.f32.mrf.mxu1 }
 0x145   :  { %v287_v15 = vadd.f32 %v286_v10, %v225_v8 }
 0x149   :  { %v246_v62 = vpop.f32.mrf.mxu3 }
 0x14a   :  { %v247_v63 = vadd.f32 %v246_v62, %v223_v61 }
 0x14c   :  { %v332_v0 = vmul.f32 -1.442695, %v247_v63 }
 0x14e   :  { %343 = vpow2.f32 %v332_v0 }
 0x154   :  { %v344_v1 = vpop.eup %343 }
 0x155   :  { %v292_v3 = vadd.f32 1.0, %v344_v1 }
 0x157   :  { %345 = vrcp.f32 %v292_v3  ;;  %v304_v11 = vand.u32 2147483648, %v292_v3  ;;  %v302_v13 = vand.u32 2147483647, %v292_v3  ;;  %vm298_vm5 = vweird.f32 %v292_v3 }
 0x158   :  { %347 = vtanh.f32 %v267_v5 }
 0x159   :  { %v305_v17 = vor.u32 1.1754944e-38, %v304_v11  ;;  %vm303_vm7 = vcmp.eq.f32.partialorder %v302_v13, 8.507059e+37 }
 0x15d   :  { %v346_v6 = vpop.eup %345 }
 0x15e   :  { %v294_v7 = vmul.f32 %v346_v6, %v292_v3  ;;  %vm299_vm4 = vweird.f32 %v346_v6  ;;  %v348_v14 = vpop.eup %347 }
 0x15f   :  { %vm300_vm6 = vmor %vm298_vm5, %vm299_vm4  ;;  %v309_v18 = vsub.f32 %v348_v14, %v287_v15 }
 0x160   :  { %v295_v9 = vsub.f32 1.0, %v294_v7 }
 0x162   :  { %v296_v12 = vmul.f32 %v346_v6, %v295_v9 }
 0x164   :  { %v297_v16 = vadd.f32 %v346_v6, %v296_v12 }
 0x166   :  { %v301_v19 = vsel %vm300_vm6, %v346_v6, %v297_v16 }
 0x167   :  { %v306_v20 = vsel %vm303_vm7, %v305_v17, %v301_v19 }
 0x168   :  { %v310_v21 = vmul.f32 %v309_v18, %v306_v20 }
 0x16a   :  { %v311_v22 = vadd.f32 %v310_v21, %v287_v15 }
 0x16c   :  { %312 = vst [vmem:[#allocation5] sm:$0xff] %v311_v22 }
 0x16d   :  { %323 = dma.vmem_to_hbm [thread:$0]  %s319_s23, 128, %s321_s26, [#allocation4]  }
 0x16e   :  { %399 = dma.done.wait [#allocation4], 128  }
 0x16f   :  { %400 = vsyncadd [#allocation4], 4294967168 }
 0x170   :  { %328 = vsyncpa [#allocation3], 1 }
 0x171   :  { %329 = vsyncpa [#allocation4], 1 }

</bundles_post_ra>
